<compile_context>
chip_gen: v7x
topology: tpu7x:2x2x1
jax: 0.10.0
libtpu: 0.0.40
codegen_flags: <defaults>
</compile_context>

<pallas_src>
import functools

import jax
import jax.numpy as jnp
from jax.experimental import pallas as pl
from jax.experimental.pallas import tpu as pltpu


# ----------------------------- helpers -------------------------------------

def _round_up(x: int, m: int) -> int:
    return ((x + m - 1) // m) * m


def _cdiv(a: int, b: int) -> int:
    return (a + b - 1) // b


_TM_MAX = 512   # rows per M block (sublane axis)
_TN_MAX = 512   # cols per N block (lane axis, output)
_TK_MAX = 2048  # reduction elements per K block


def _vmem_capacity_bytes() -> int:
    """Per-core VMEM capacity; conservative fallback if the query fails."""
    try:
        info = pltpu.get_tpu_info()
        cap = int(getattr(info, "vmem_capacity_bytes", 0))
        if cap > 0:
            return cap
    except Exception:
        pass
    return 64 << 20  # v7x per-TC VMEM (smallest of the supported chips)


def _tile_footprint_bytes(tm: int, tk: int, tn: int) -> int:
    # bf16 x / W tiles, f32 bias / output / accumulator.
    # Inputs and outputs are double-buffered by the BlockSpec pipeline.
    x_t = tm * tk * 2
    w_t = tk * tn * 2
    b_t = tn * 4
    o_t = tm * tn * 4
    acc = tm * tn * 4
    return 2 * (x_t + w_t + b_t + o_t) + acc


def _plan_kn(d_in: int, d_out: int, vmem_budget: int):
    """Pick K/N tiling (B-independent, so the padded weight can be cached)."""
    tk_max, tn_max = _TK_MAX, _TN_MAX
    # Shrink caps until the worst-case (tm = _TM_MAX) footprint fits the budget.
    while _tile_footprint_bytes(_TM_MAX, tk_max, tn_max) > vmem_budget and tk_max > 512:
        tk_max //= 2
    while _tile_footprint_bytes(_TM_MAX, tk_max, tn_max) > vmem_budget and tn_max > 128:
        tn_max //= 2

    kp_full = _round_up(d_in, 128)
    k_blocks = _cdiv(kp_full, tk_max)
    tk = 128 * _cdiv(kp_full, 128 * k_blocks)
    kp = tk * k_blocks

    np_full = _round_up(d_out, 128)
    n_blocks = _cdiv(np_full, tn_max)
    tn = 128 * _cdiv(np_full, 128 * n_blocks)
    np_ = tn * n_blocks

    return tk, kp, k_blocks, tn, np_, n_blocks


# ----------------------------- kernels -------------------------------------

def _decoder_kernel_single_k(x_ref, w_ref, b_ref, o_ref, *, apply_sigmoid: bool):
    """Whole reduction in one block: dot + bias (+ sigmoid) straight to output."""
    z = jnp.dot(x_ref[...], w_ref[...], preferred_element_type=jnp.float32)
    z = z + b_ref[...]
    if apply_sigmoid:
        z = jax.nn.sigmoid(z)
    o_ref[...] = z.astype(o_ref.dtype)


def _decoder_kernel_multi_k(x_ref, w_ref, b_ref, o_ref, acc_ref, *, apply_sigmoid: bool):
    """K-tiled matmul with f32 VMEM accumulator; last K step fused into epilogue."""
    k = pl.program_id(2)
    nk = pl.num_programs(2)

    partial = jnp.dot(x_ref[...], w_ref[...], preferred_element_type=jnp.float32)

    @pl.when(k == 0)
    def _():
        acc_ref[...] = partial  # first step writes directly (no zero-init pass)

    @pl.when(jnp.logical_and(k > 0, k < nk - 1))
    def _():
        acc_ref[...] = acc_ref[...] + partial

    @pl.when(k == nk - 1)
    def _():
        # Fuse the last partial product into the epilogue (saves one acc
        # store+load per output block); bias + activation in f32, downcast once.
        z = acc_ref[...] + partial + b_ref[...]
        if apply_sigmoid:
            z = jax.nn.sigmoid(z)
        o_ref[...] = z.astype(o_ref.dtype)


# ----------------------------- wrappers ------------------------------------

def prepare_decoder_params(weight, bias):
    """One-time prep (at model load): transpose, zero-pad, cast weight to bf16.

    weight: (D_out, D_in) float32 (PyTorch nn.Linear convention)
    bias:   (D_out,)      float32
    """
    d_out, d_in = weight.shape
    vmem_cap = _vmem_capacity_bytes()
    tk, kp, k_blocks, tn, np_, n_blocks = _plan_kn(d_in, d_out, vmem_cap // 2)

    w_t = jnp.asarray(weight, jnp.float32).T  # (D_in, D_out): D_out on lanes
    if (kp, np_) != (d_in, d_out):
        w_t = jnp.pad(w_t, ((0, kp - d_in), (0, np_ - d_out)))
    wp = w_t.astype(jnp.bfloat16)  # bf16 MXU operand; zeros in padding

    bp = jnp.pad(jnp.asarray(bias, jnp.float32), (0, np_ - d_out)).reshape(1, np_)

    return {
        "wp": wp, "bp": bp,
        "D_in": d_in, "D_out": d_out,
        "tk": tk, "Kp": kp, "k_blocks": k_blocks,
        "tn": tn, "Np": np_, "n_blocks": n_blocks,
        "vmem_cap": vmem_cap,
    }


def decoder_forward_prepared(x, params, *, sigmoid: bool):
    """Pallas equivalent of Decoder.forward using pre-prepared weights."""
    B, d_in = x.shape
    assert d_in == params["D_in"]
    d_out = params["D_out"]
    tk, kp, k_blocks = params["tk"], params["Kp"], params["k_blocks"]
    tn, np_, n_blocks = params["tn"], params["Np"], params["n_blocks"]

    # M tiling: scale tm with B and minimize padding.
    bp8 = _round_up(B, 8)
    m_blocks = _cdiv(bp8, _TM_MAX)
    tm = 8 * _cdiv(B, 8 * m_blocks)
    # v7x has 2 TensorCores sharded via "parallel" axes: make sure at least two
    # blocks exist on a parallel axis when the problem is big enough.
    if m_blocks * n_blocks == 1 and bp8 >= 16:
        m_blocks = 2
        tm = 8 * _cdiv(B, 16)
    bp = tm * m_blocks

    xp = jnp.asarray(x, jnp.float32)
    if (bp, kp) != (B, d_in):
        xp = jnp.pad(xp, ((0, bp - B), (0, kp - d_in)))
    xp = xp.astype(jnp.bfloat16)  # bf16 MXU operand; f32 accumulation in-kernel

    cost = pl.CostEstimate(
        flops=2 * B * d_in * d_out,
        transcendentals=(B * d_out) if sigmoid else 0,
        bytes_accessed=2 * B * d_in + 2 * d_in * d_out + 4 * d_out + 4 * B * d_out,
    )

    compiler_params = pltpu.CompilerParams(
        dimension_semantics=(
            ("parallel", "parallel", "arbitrary") if k_blocks > 1
            else ("parallel", "parallel")
        ),
        # Above the 16/32 MiB scoped defaults, below physical capacity.
        vmem_limit_bytes=min(int(params["vmem_cap"]) * 3 // 4, 96 << 20),
    )

    if k_blocks == 1:
        kernel = functools.partial(_decoder_kernel_single_k, apply_sigmoid=sigmoid)
        grid_spec = pltpu.PrefetchScalarGridSpec(
            num_scalar_prefetch=0,
            grid=(m_blocks, n_blocks),
            in_specs=[
                pl.BlockSpec((tm, tk), lambda i, j: (i, 0)),   # x tile
                pl.BlockSpec((tk, tn), lambda i, j: (0, j)),   # W^T tile
                pl.BlockSpec((1, tn), lambda i, j: (0, j)),    # bias tile
            ],
            out_specs=pl.BlockSpec((tm, tn), lambda i, j: (i, j)),
        )
    else:
        kernel = functools.partial(_decoder_kernel_multi_k, apply_sigmoid=sigmoid)
        grid_spec = pltpu.PrefetchScalarGridSpec(
            num_scalar_prefetch=0,
            grid=(m_blocks, n_blocks, k_blocks),
            in_specs=[
                pl.BlockSpec((tm, tk), lambda i, j, k: (i, k)),   # x tile
                pl.BlockSpec((tk, tn), lambda i, j, k: (k, j)),   # W^T tile
                pl.BlockSpec((1, tn), lambda i, j, k: (0, j)),    # bias tile
            ],
            out_specs=pl.BlockSpec((tm, tn), lambda i, j, k: (i, j)),
            scratch_shapes=[pltpu.VMEM((tm, tn), jnp.float32)],
        )

    out_padded = pl.pallas_call(
        kernel,
        out_shape=jax.ShapeDtypeStruct((bp, np_), jnp.float32),
        grid_spec=grid_spec,
        compiler_params=compiler_params,
        cost_estimate=cost,
    )(xp, params["wp"], params["bp"])

    return out_padded[:B, :d_out]


def decoder_forward(x, weight, bias, *, sigmoid: bool):
    """Convenience wrapper (prepares the weight per call; prefer the prepared path)."""
    return decoder_forward_prepared(x, prepare_decoder_params(weight, bias), sigmoid=sigmoid)


def decoder_reference(x, weight, bias, *, sigmoid: bool):
    z = x @ weight.T + bias
    return jax.nn.sigmoid(z) if sigmoid else z


def _make_linear_params(key, d_in, d_out):
    kw, kb = jax.random.split(key)
    bound = 1.0 / jnp.sqrt(jnp.float32(d_in))
    weight = jax.random.uniform(kw, (d_out, d_in), jnp.float32, minval=-bound, maxval=bound)
    bias = jax.random.uniform(kb, (d_out,), jnp.float32, minval=-bound, maxval=bound)
    return weight, bias


if __name__ == "__main__":
    key = jax.random.PRNGKey(0)
    k1, k2, k3, k4, k5 = jax.random.split(key, 5)

    # bf16 MXU operands -> loosen tolerance vs the f32 reference.
    TOL = dict(atol=5e-2, rtol=5e-2)

    # --- Case 1: Decoder(layers=[32, 16]), tiny demo shape (single-K path) ---
    B, D_in, D_out = 8, 32, 16
    x = jax.random.normal(k1, (B, D_in), dtype=jnp.float32)
    weight, bias = _make_linear_params(k2, D_in, D_out)
    prep = prepare_decoder_params(weight, bias)  # weight prepared once

    y_sig = decoder_forward_prepared(x, prep, sigmoid=True)
    jax.block_until_ready(y_sig)
    assert jnp.allclose(y_sig, decoder_reference(x, weight, bias, sigmoid=True), **TOL)

    y_lin = decoder_forward_prepared(x, prep, sigmoid=False)
    jax.block_until_ready(y_lin)
    assert jnp.allclose(y_lin, decoder_reference(x, weight, bias, sigmoid=False), **TOL)

    # --- Case 2: larger, unaligned shapes (single-K path, 2 M-blocks) ---
    B2, D_in2, D_out2 = 260, 640, 200
    x2 = jax.random.normal(k3, (B2, D_in2), dtype=jnp.float32)
    weight2, bias2 = _make_linear_params(k4, D_in2, D_out2)
    y2 = decoder_forward(x2, weight2, bias2, sigmoid=True)
    jax.block_until_ready(y2)
    assert jnp.allclose(y2, decoder_reference(x2, weight2, bias2, sigmoid=True), **TOL)

    # --- Case 3: D_in > tk cap -> exercises the multi-K accumulator path ---
    B3, D_in3, D_out3 = 24, 2304, 144
    x3 = jax.random.normal(k5, (B3, D_in3), dtype=jnp.float32)
    weight3, bias3 = _make_linear_params(k2, D_in3, D_out3)
    y3 = decoder_forward(x3, weight3, bias3, sigmoid=False)
    jax.block_until_ready(y3)
    assert jnp.allclose(y3, decoder_reference(x3, weight3, bias3, sigmoid=False), **TOL)

    print("KERNEL_OK")
</pallas_src>

<mosaic_0001>
module attributes {stable_mosaic.version = 11 : i64} {
  func.func @_decoder_kernel_single_k(%arg0: i32, %arg1: i32, %arg2: memref<8x128xbf16, #tpu.memory_space<vmem>>, %arg3: memref<128x128xbf16, #tpu.memory_space<vmem>>, %arg4: memref<1x128xf32, #tpu.memory_space<vmem>>, %arg5: memref<8x128xf32, #tpu.memory_space<vmem>>) attributes {dimension_semantics = [#tpu.dimension_semantics<parallel>, #tpu.dimension_semantics<parallel>], iteration_bounds = array<i64: 1, 1>, scalar_prefetch = 0 : i64, scratch_operands = 0 : i64, tpu.core_type = #tpu.core_type<tc>, window_params = [{transform_indices = @transform_0, window_bounds = array<i64: 8, 128>}, {transform_indices = @transform_1, window_bounds = array<i64: 128, 128>}, {transform_indices = @transform_2, window_bounds = array<i64: 1, 128>}, {transform_indices = @transform_3, window_bounds = array<i64: 8, 128>}]} {
    %c0 = arith.constant 0 : index
    %c0_0 = arith.constant 0 : index
    %0 = vector.load %arg2[%c0, %c0_0] : memref<8x128xbf16, #tpu.memory_space<vmem>>, vector<8x128xbf16>
    %c0_1 = arith.constant 0 : index
    %c0_2 = arith.constant 0 : index
    %1 = vector.load %arg3[%c0_1, %c0_2] : memref<128x128xbf16, #tpu.memory_space<vmem>>, vector<128x128xbf16>
    %cst = arith.constant dense<0.000000e+00> : vector<8x128xf32>
    %2 = tpu.matmul %0, %1, %cst {dimension_numbers = #tpu.dot_dimension_numbers<[1], [0], [0], [1], [0, 0, 1, 1], [], []>} : vector<8x128xbf16>, vector<128x128xbf16>, vector<8x128xf32> -> vector<8x128xf32>
    %c0_3 = arith.constant 0 : index
    %c0_4 = arith.constant 0 : index
    %3 = vector.load %arg4[%c0_3, %c0_4] : memref<1x128xf32, #tpu.memory_space<vmem>>, vector<1x128xf32>
    %4 = vector.broadcast %3 : vector<1x128xf32> to vector<8x128xf32>
    %5 = arith.addf %2, %4 : vector<8x128xf32>
    %6 = arith.negf %5 : vector<8x128xf32>
    %7 = math.exp %6 : vector<8x128xf32>
    %cst_5 = arith.constant 1.000000e+00 : f32
    %8 = vector.broadcast %cst_5 : f32 to vector<8x128xf32>
    %9 = arith.addf %8, %7 : vector<8x128xf32>
    %10 = arith.divf %8, %9 : vector<8x128xf32>
    %c0_6 = arith.constant 0 : index
    %c0_7 = arith.constant 0 : index
    %11 = vector.load %arg5[%c0_6, %c0_7] : memref<8x128xf32, #tpu.memory_space<vmem>>, vector<8x128xf32>
    tpu.vector_store %arg5[%c0_6, %c0_7], %10 {strides = array<i32>} : memref<8x128xf32, #tpu.memory_space<vmem>>, vector<8x128xf32>,
    return
  }
  func.func @transform_0(%arg0: i32, %arg1: i32) -> (i32, i32) {
    %c0_i32 = arith.constant 0 : i32
    %c0_i32_0 = arith.constant 0 : i32
    return %arg0, %c0_i32 : i32, i32
  }
  func.func @transform_1(%arg0: i32, %arg1: i32) -> (i32, i32) {
    %c0_i32 = arith.constant 0 : i32
    %c0_i32_0 = arith.constant 0 : i32
    return %c0_i32, %arg1 : i32, i32
  }
  func.func @transform_2(%arg0: i32, %arg1: i32) -> (i32, i32) {
    %c0_i32 = arith.constant 0 : i32
    %c0_i32_0 = arith.constant 0 : i32
    return %c0_i32, %arg1 : i32, i32
  }
  func.func @transform_3(%arg0: i32, %arg1: i32) -> (i32, i32) {
    %c0_i32 = arith.constant 0 : i32
    return %arg0, %arg1 : i32, i32
  }
}

</mosaic_0001>

<bundles_post_ra>
// kernel: tpu_custom_call.1
= control target key start
LH: loop header
LB: loop body
LE: loop exit
PB: predicated region body
PF: predicated region fallthrough
CT: control target
= control target key end

     0   :  { %8 = vsyncpa [#allocation3], 0  ;;  %s380_s0 = inlined_call_operand.hbm [shape: bf16[8,128], index: 0, kind: input, shape index: {}]   ;;  %s381_s1 = inlined_call_operand.hbm [shape: bf16[128,128], index: 1, kind: input, shape index: {}]   ;;  %s382_s2 = inlined_call_operand.vmem [shape: f32[1,128], index: 2, kind: input, shape index: {}]   ;;  %s383_s3 = inlined_call_operand.hbm [shape: f32[8,128], index: 3, kind: output, shape index: {}]  }
   0x1   :  { %9 = vsyncpa [#allocation6], 0 }
   0x2   :  { %10 = vsyncpa [#allocation4], 0  ;;  %s307_s12 = smov [#allocation2]   ;;  %s308_s14 = smov [#allocation5]  }
   0x3   :  { %s17_s13 = sshll.u32 %s307_s12, 4  ;;  %s26_s15 = sshll.u32 %s308_s14, 4  ;;  %s18_s13 = int_to_ptr.vmem [resolvable:$true] %s17_s13  ;;  %s334_s15 = int_to_ptr.vmem [resolvable:$true] %s26_s15 }
   0x4   :  { %s235_s18 = scalar_lea.hbm %s380_s0, 64 }
   0x5   :  { %p236_p0 = scmp.ne.s32.totalorder %s380_s0, %s235_s18  ;;  %p239_p1 = scmp.lt.u32.totalorder %s235_s18, %s380_s0 }
   0x7   :  { %p241_p2 = pnand %p239_p1, %p236_p0 }
   0x9   :  { %244 = shalt.err (!%p241_p2)
}
   0xa   :  { %s245_s23 = scalar_lea.vmem %s18_s13, 64  ;;  %p250_p4 = scmp.lt.s32.totalorder %s18_s13, %s18_s13 }
   0xb   :  { %p246_p3 = scmp.ne.s32.totalorder %s18_s13, %s245_s23  ;;  %p251_p5 = scmp.lt.s32.totalorder %s245_s23, %s245_s23 }
   0xd   :  { %p252_p6 = por %p251_p5, %p250_p4 }
   0xf   :  { %p253_p7 = pnand %p252_p6, %p246_p3 }
  0x11   :  { %256 = shalt.err (!%p253_p7)
}
  0x12   :  { %20 = dma.hbm_to_vmem [thread:$0]  %s380_s0, 64, %s18_s13, [#allocation3]  }
  0x13   :  { %s257_s28 = scalar_lea.hbm %s381_s1, 1024 }
  0x14   :  { %p258_p8 = scmp.ne.s32.totalorder %s381_s1, %s257_s28  ;;  %p261_p9 = scmp.lt.u32.totalorder %s257_s28, %s381_s1 }
  0x16   :  { %p263_p10 = pnand %p261_p9, %p258_p8 }
  0x18   :  { %266 = shalt.err (!%p263_p10)
}
  0x19   :  { %s267_s6 = scalar_lea.vmem %s334_s15, 1024  ;;  %p272_p12 = scmp.lt.s32.totalorder %s334_s15, %s334_s15 }
  0x1a   :  { %p268_p11 = scmp.ne.s32.totalorder %s334_s15, %s267_s6  ;;  %p273_p13 = scmp.lt.s32.totalorder %s267_s6, %s267_s6 }
  0x1c   :  { %p274_p0 = por %p273_p13, %p272_p12 }
  0x1e   :  { %p275_p1 = pnand %p274_p0, %p268_p11 }
  0x20   :  { %278 = shalt.err (!%p275_p1)
}
  0x21   :  { %s309_s0 = smov 64   ;;  %s310_s7 = smov 4  }
  0x22   :  { %32 = dma.hbm_to_vmem [thread:$0]  %s381_s1, 1024, %s334_s15, [#allocation6], %s309_s0, %s309_s0, %s310_s7  }
  0x23   :  { %301 = dma.done.wait [#allocation3], 64  }
  0x24   :  { %302 = vsyncadd [#allocation3], 4294967232 }
  0x25   :  { %303 = dma.done.wait [#allocation6], 1024  }
  0x26   :  { %304 = vsyncadd [#allocation6], 4294966272  ;;  %v311_v0 = vmov 0.0   ;;  %vm312_vm0 = vmmov 0   ;;  %v223_v1 = vld [vmem:[#allocation5] sm:$0xff]   ;;  %v224_v2 = vld [vmem:[#allocation5 + $0x8] sm:$0xff]  }
  0x27   :  { %196 = vmatprep.subr.bf16.mxu0 %v311_v0  ;;  %212 = vmatprep.mubr.msk.bf16.mxu0 %vm312_vm0, %v311_v0  ;;  %v225_v3 = vld [vmem:[#allocation5 + $0x10] sm:$0xff]   ;;  %v226_v4 = vld [vmem:[#allocation5 + $0x18] sm:$0xff]   ;;  %v227_v5 = vld [vmem:[#allocation5 + $0x20] sm:$0xff]   ;;  %s313_s11 = smov [#allocation7]  }
  0x28   :  { %197 = vmatpush3.bf16.msra.mxu0 %v223_v1  ;;  %v228_v6 = vld [vmem:[#allocation5 + $0x28] sm:$0xff]   ;;  %v229_v7 = vld [vmem:[#allocation5 + $0x30] sm:$0xff]   ;;  %v230_v8 = vld [vmem:[#allocation5 + $0x38] sm:$0xff]   ;;  %s167_s12 = sshll.u32 %s313_s11, 4  ;;  %s168_s12 = int_to_ptr.vmem [resolvable:$true] %s167_s12 }
  0x29   :  { %198 = vmatprep.subr.bf16.mxu0 %v311_v0  ;;  %v42_v9 = vld [vmem:[#allocation2] sm:$0xf]  ;;  %s279_s13 = scalar_lea.vmem %s168_s12, 128  ;;  %p284_p3 = scmp.lt.s32.totalorder %s168_s12, %s168_s12 }
  0x2a   :  { %v177_v10 = vld [vmem:[%s382_s2] ss:$0 sm:$0xff]  ;;  %p280_p2 = scmp.ne.s32.totalorder %s168_s12, %s279_s13  ;;  %p285_p4 = scmp.lt.s32.totalorder %s279_s13, %s279_s13 }
  0x2c   :  { %199 = vmatpush3.bf16.msra.mxu0 %v224_v2  ;;  %p286_p5 = por %p285_p4, %p284_p3 }
  0x2d   :  { %200 = vmatprep.subr.bf16.mxu0 %v311_v0 }
  0x2e   :  { %p287_p6 = pnand %p286_p5, %p280_p2 }
  0x30   :  { %201 = vmatpush3.bf16.msra.mxu0 %v225_v3 }
  0x31   :  { %202 = vmatprep.subr.bf16.mxu0 %v311_v0 }
  0x34   :  { %203 = vmatpush3.bf16.msra.mxu0 %v226_v4 }
  0x35   :  { %204 = vmatprep.subr.bf16.mxu0 %v311_v0 }
  0x38   :  { %205 = vmatpush3.bf16.msra.mxu0 %v227_v5 }
  0x39   :  { %206 = vmatprep.subr.bf16.mxu0 %v311_v0 }
  0x3c   :  { %207 = vmatpush3.bf16.msra.mxu0 %v228_v6 }
  0x3d   :  { %208 = vmatprep.subr.bf16.mxu0 %v311_v0 }
  0x40   :  { %209 = vmatpush3.bf16.msra.mxu0 %v229_v7 }
  0x41   :  { %210 = vmatprep.subr.bf16.mxu0 %v311_v0 }
  0x44   :  { %211 = vmatpush3.bf16.msra.mxu0 %v230_v8 }
  0x47   :  { %213 = vmatmul.mubr.bf16.vlgmr.msra.gmra.mrb[0].mxu0 %v42_v9 }
 0x11a   :  { %v148_v11 = vpop.f32.mrb[0].mxu0 }
 0x11b   :  { %v149_v12 = vadd.f32 %v177_v10, %v148_v11  ;;  %v214_v13 = vpop.f32.mrb[1].mxu0 }
 0x11c   :  { %v151_v14 = vpop.f32.mrb[2].mxu0 }
 0x11d   :  { %v186_v15 = vmul.f32 -1.442695, %v149_v12  ;;  %v215_v16 = vpop.f32.mrb[3].mxu0 }
 0x11f   :  { %231 = vpow2.f32 %v186_v15 }
 0x129   :  { %v232_v17 = vpop.eup %231 }
 0x12a   :  { %v157_v18 = vadd.f32 1.0, %v232_v17 }
 0x12c   :  { %233 = vrcp.f32 %v157_v18 }
 0x136   :  { %v234_v19 = vpop.eup %233 }
 0x137   :  { %160 = vst [vmem:[#allocation7] sm:$0xff] %v234_v19 }
 0x138   :  { %290 = shalt.err (!%p287_p6)
}
 0x139   :  { %s291_s15 = scalar_lea.hbm %s383_s3, 128 }
 0x13a   :  { %p292_p7 = scmp.ne.s32.totalorder %s383_s3, %s291_s15  ;;  %p295_p8 = scmp.lt.u32.totalorder %s291_s15, %s383_s3 }
 0x13c   :  { %p297_p9 = pnand %p295_p8, %p292_p7 }
 0x13e   :  { %300 = shalt.err (!%p297_p9)
}
 0x13f   :  { %170 = dma.vmem_to_hbm [thread:$0]  %s168_s12, 128, %s383_s3, [#allocation4]  }
 0x140   :  { %305 = dma.done.wait [#allocation4], 128  }
 0x141   :  { %306 = vsyncadd [#allocation4], 4294967168 }
 0x142   :  { %174 = vsyncpa [#allocation3], 1 }
 0x143   :  { %175 = vsyncpa [#allocation6], 1 }
 0x144   :  { %176 = vsyncpa [#allocation4], 1 }

</bundles_post_ra>
